<compile_context>
chip_gen: v7x
topology: tpu7x:2x2x1
jax: 0.10.0
libtpu: 0.0.40
codegen_flags: <defaults>
</compile_context>

<pallas_src>
import jax
import jax.numpy as jnp
from jax import lax
from jax.experimental import pallas as pl
from jax.experimental.pallas import tpu as pltpu


# --------------------------------------------------------------------------
# Single-pass kernel: one (b_blk, C, T) tile per grid step.
# --------------------------------------------------------------------------
def _se_kernel(x_ref, w1t_ref, b1_ref, w2t_ref, b2_ref, o_ref):
    inv_t = 1.0 / x_ref.shape[2]

    # Squeeze: mean over T, accumulated in f32 (native-dtype tile upcast per-use).
    mean = jnp.sum(x_ref[...].astype(jnp.float32), axis=2) * inv_t       # (b_blk, C)

    # Excite: two 1x1 convs as lane-dense batched matmuls on resident weights.
    h = jnp.dot(mean, w1t_ref[...], preferred_element_type=jnp.float32) + b1_ref[...]
    h = jnp.maximum(h, 0.0)
    s = jnp.dot(h, w2t_ref[...], preferred_element_type=jnp.float32) + b2_ref[...]
    gate = jax.nn.sigmoid(s).astype(o_ref.dtype)                          # (b_blk, C)

    # Re-index x_ref (avoid keeping a whole-tile f32 temp alive) and scale in
    # the native dtype.  Gate broadcasts over T.
    o_ref[...] = x_ref[...] * gate[:, :, None]


def _clamp_vmem(bytes_needed):
    # Leave the default 32 MiB floor; cap at 56 MiB (safe on v7x's 64 MiB/TC).
    return int(min(max(bytes_needed, 32 << 20), 56 << 20))


def se_module(x, w1, b1, w2, b2, *,
              target_tile_bytes=4 * 1024 * 1024,
              min_grid_steps=8,
              max_single_pass_row_f32_bytes=8 * 1024 * 1024,
              two_pass=None):
    """SE forward.  x: (B, C, T) any float dtype.
    w1: (bneck, C), b1: (bneck,), w2: (C, bneck), b2: (C,)."""
    B, C, T = x.shape
    bneck = w1.shape[0]
    itemsize = jnp.dtype(x.dtype).itemsize

    # Pre-transpose weights so both 1x1 convs contract over C / bneck with the
    # output channel axis on lanes.  Biases lane-major.  Weights stay f32.
    w1t = jnp.asarray(w1, jnp.float32).T                  # (C, bneck)
    w2t = jnp.asarray(w2, jnp.float32).T                  # (bneck, C)
    b1r = jnp.asarray(b1, jnp.float32).reshape(1, bneck)
    b2r = jnp.asarray(b2, jnp.float32).reshape(1, C)
    weight_bytes = 4 * (2 * C * bneck + C + bneck)

    if two_pass is None:
        # If a single batch row (in f32) is too big for a per-step tile, fall
        # back to the T-tiled two-pass path instead of blowing scoped VMEM.
        two_pass = (C * T * 4) > max_single_pass_row_f32_bytes

    # ------------------------------------------------------------------
    # Main path: grid over batch, full (C, T) per row.
    # ------------------------------------------------------------------
    if not two_pass:
        row_bytes = C * T * itemsize
        blk_budget = max(1, target_tile_bytes // row_bytes)      # ~multi-MiB tiles
        blk_steps = max(1, pl.cdiv(B, min_grid_steps))           # keep several steps
        b_blk = int(min(B, blk_budget, blk_steps))
        grid = (pl.cdiv(B, b_blk),)                              # ragged tail is masked

        tile_native = b_blk * C * T * itemsize
        tile_f32 = b_blk * C * T * 4
        vmem_limit = _clamp_vmem(4 * tile_native          # 2x in + 2x out buffers
                                 + 2 * tile_f32           # in-kernel f32 temporaries
                                 + 4 * weight_bytes
                                 + (2 << 20))

        return pl.pallas_call(
            _se_kernel,
            out_shape=jax.ShapeDtypeStruct((B, C, T), x.dtype),
            grid_spec=pltpu.PrefetchScalarGridSpec(
                num_scalar_prefetch=0,
                grid=grid,
                in_specs=[
                    pl.BlockSpec((b_blk, C, T), lambda i: (i, 0, 0)),  # x batch tile
                    pl.BlockSpec((C, bneck), lambda i: (0, 0)),        # w1^T resident
                    pl.BlockSpec((1, bneck), lambda i: (0, 0)),        # b1
                    pl.BlockSpec((bneck, C), lambda i: (0, 0)),        # w2^T resident
                    pl.BlockSpec((1, C), lambda i: (0, 0)),            # b2
                ],
                out_specs=pl.BlockSpec((b_blk, C, T), lambda i: (i, 0, 0)),
            ),
            compiler_params=pltpu.CompilerParams(
                dimension_semantics=("parallel",),   # shards across v7x TensorCores
                vmem_limit_bytes=vmem_limit,
            ),
        )(x, w1t, b1r, w2t, b2r)

    # ------------------------------------------------------------------
    # Fallback: two passes, tiled over T (one batch row per block).
    # ------------------------------------------------------------------
    t_blk_target = max(1, target_tile_bytes // (C * itemsize))
    if t_blk_target >= T:
        t_blk = T
    else:
        t_blk = max(128, (t_blk_target // 128) * 128)            # (8,128) rule
        if t_blk >= T:
            t_blk = T
    nt = pl.cdiv(T, t_blk)
    mask_t = (T % t_blk) != 0

    # ---- pass 1: sum over T (accumulated in the resident output block), then
    #      compute the (1, C) gate on the last T step with the resident weights.
    def _gate_kernel(x_ref, w1t_ref, b1_ref, w2t_ref, b2_ref, gate_ref):
        t = pl.program_id(1)

        @pl.when(t == 0)
        def _():
            gate_ref[...] = jnp.zeros_like(gate_ref)

        xs = x_ref[...].astype(jnp.float32)                      # (1, C, t_blk)
        if mask_t:
            idx = lax.broadcasted_iota(jnp.int32, xs.shape, 2) + t * t_blk
            xs = jnp.where(idx < T, xs, 0.0)
        gate_ref[...] += jnp.sum(xs, axis=2)

        @pl.when(t == pl.num_programs(1) - 1)
        def _():
            mean = gate_ref[...] * (1.0 / T)
            h = jnp.dot(mean, w1t_ref[...],
                        preferred_element_type=jnp.float32) + b1_ref[...]
            h = jnp.maximum(h, 0.0)
            s = jnp.dot(h, w2t_ref[...],
                        preferred_element_type=jnp.float32) + b2_ref[...]
            gate_ref[...] = jax.nn.sigmoid(s)

    tile_native = C * t_blk * itemsize
    tile_f32 = C * t_blk * 4
    vmem_p1 = _clamp_vmem(2 * tile_native + 2 * tile_f32
                          + 4 * weight_bytes + 4 * C * 4 + (2 << 20))

    gates = pl.pallas_call(
        _gate_kernel,
        out_shape=jax.ShapeDtypeStruct((B, C), jnp.float32),
        grid_spec=pltpu.PrefetchScalarGridSpec(
            num_scalar_prefetch=0,
            grid=(B, nt),
            in_specs=[
                pl.BlockSpec((1, C, t_blk), lambda b, t: (b, 0, t)),
                pl.BlockSpec((C, bneck), lambda b, t: (0, 0)),
                pl.BlockSpec((1, bneck), lambda b, t: (0, 0)),
                pl.BlockSpec((bneck, C), lambda b, t: (0, 0)),
                pl.BlockSpec((1, C), lambda b, t: (0, 0)),
            ],
            out_specs=pl.BlockSpec((1, C), lambda b, t: (b, 0)),
        ),
        compiler_params=pltpu.CompilerParams(
            dimension_semantics=("parallel", "arbitrary"),   # T is a reduction
            vmem_limit_bytes=vmem_p1,
        ),
    )(x, w1t, b1r, w2t, b2r)

    # ---- pass 2: stream x tiled over (B, T) and scale by the resident gate.
    def _scale_kernel(gate_ref, x_ref, o_ref):
        g = gate_ref[...].astype(o_ref.dtype)                    # (1, C)
        o_ref[...] = x_ref[...] * g[:, :, None]

    vmem_p2 = _clamp_vmem(4 * tile_native + 4 * C * 4 + (2 << 20))

    return pl.pallas_call(
        _scale_kernel,
        out_shape=jax.ShapeDtypeStruct((B, C, T), x.dtype),
        grid_spec=pltpu.PrefetchScalarGridSpec(
            num_scalar_prefetch=0,
            grid=(B, nt),
            in_specs=[
                pl.BlockSpec((1, C), lambda b, t: (b, 0)),
                pl.BlockSpec((1, C, t_blk), lambda b, t: (b, 0, t)),
            ],
            out_specs=pl.BlockSpec((1, C, t_blk), lambda b, t: (b, 0, t)),
        ),
        compiler_params=pltpu.CompilerParams(
            dimension_semantics=("parallel", "parallel"),
            vmem_limit_bytes=vmem_p2,
        ),
    )(gates, x)


def se_module_ref(x, w1, b1, w2, b2):
    """Pure-JAX reference matching the PyTorch forward (computed in f32)."""
    xf = x.astype(jnp.float32)
    mean = jnp.mean(xf, axis=2, keepdims=True)                        # (B, C, 1)
    h = jnp.einsum("oc,bct->bot", w1, mean) + b1[None, :, None]       # (B, bneck, 1)
    h = jnp.maximum(h, 0.0)
    s = jnp.einsum("co,bot->bct", w2, h) + b2[None, :, None]          # (B, C, 1)
    return xf * jax.nn.sigmoid(s)


if __name__ == "__main__":
    key = jax.random.PRNGKey(0)
    B, C, T = 4, 16, 256
    BOTTLENECK = 8

    k_x, k_w1, k_b1, k_w2, k_b2 = jax.random.split(key, 5)
    x = jax.random.normal(k_x, (B, C, T), dtype=jnp.float32)
    # Conv1d kernel_size=1 weights squeeze to plain matrices.
    w1 = 0.1 * jax.random.normal(k_w1, (BOTTLENECK, C), dtype=jnp.float32)
    b1 = 0.1 * jax.random.normal(k_b1, (BOTTLENECK,), dtype=jnp.float32)
    w2 = 0.1 * jax.random.normal(k_w2, (C, BOTTLENECK), dtype=jnp.float32)
    b2 = 0.1 * jax.random.normal(k_b2, (C,), dtype=jnp.float32)

    ref = se_module_ref(x, w1, b1, w2, b2)

    # 1) Main single-pass path, native f32 streaming.
    out = jax.block_until_ready(se_module(x, w1, b1, w2, b2))
    assert out.shape == (B, C, T) and out.dtype == x.dtype
    assert jnp.allclose(out, ref, atol=1e-5, rtol=1e-5), "single-pass mismatch"

    # 2) bf16 I/O: streams x/out in bf16, upcasts per-tile inside the kernel.
    x_bf16 = x.astype(jnp.bfloat16)
    out_bf16 = jax.block_until_ready(se_module(x_bf16, w1, b1, w2, b2))
    ref_bf16 = se_module_ref(x_bf16, w1, b1, w2, b2)
    assert out_bf16.dtype == jnp.bfloat16
    assert jnp.allclose(out_bf16.astype(jnp.float32), ref_bf16,
                        atol=5e-2, rtol=5e-2), "bf16 mismatch"

    # 3) Forced two-pass T-tiled fallback (small tiles to exercise T tiling and
    #    the ragged-T mask with T=200).
    T2 = 200
    x2 = jax.random.normal(jax.random.PRNGKey(1), (B, C, T2), dtype=jnp.float32)
    ref2 = se_module_ref(x2, w1, b1, w2, b2)
    out2 = jax.block_until_ready(
        se_module(x2, w1, b1, w2, b2, two_pass=True, target_tile_bytes=8 * 1024))
    assert jnp.allclose(out2, ref2, atol=1e-5, rtol=1e-5), "two-pass mismatch"

    # 4) Ragged batch tail on the main path (B=5 with b_blk=3 -> cdiv grid).
    B3 = 5
    x3 = jax.random.normal(jax.random.PRNGKey(2), (B3, C, T), dtype=jnp.float32)
    ref3 = se_module_ref(x3, w1, b1, w2, b2)
    out3 = jax.block_until_ready(se_module(x3, w1, b1, w2, b2, min_grid_steps=2))
    assert jnp.allclose(out3, ref3, atol=1e-5, rtol=1e-5), "ragged-batch mismatch"

    print("KERNEL_OK")
</pallas_src>

<mosaic_0001>
module attributes {stable_mosaic.version = 11 : i64} {
  func.func @_se_kernel(%arg0: i32, %arg1: memref<1x16x256xf32, #tpu.memory_space<vmem>>, %arg2: memref<16x8xf32, #tpu.memory_space<vmem>>, %arg3: memref<1x8xf32, #tpu.memory_space<vmem>>, %arg4: memref<8x16xf32, #tpu.memory_space<vmem>>, %arg5: memref<1x16xf32, #tpu.memory_space<vmem>>, %arg6: memref<1x16x256xf32, #tpu.memory_space<vmem>>) attributes {dimension_semantics = [#tpu.dimension_semantics<parallel>], iteration_bounds = array<i64: 4>, scalar_prefetch = 0 : i64, scratch_operands = 0 : i64, tpu.core_type = #tpu.core_type<tc>, window_params = [{transform_indices = @transform_0, window_bounds = array<i64: 1, 16, 256>}, {pipeline_mode = #tpu.pipeline_mode<synchronous>, transform_indices = @transform_1, window_bounds = array<i64: 16, 8>}, {pipeline_mode = #tpu.pipeline_mode<synchronous>, transform_indices = @transform_2, window_bounds = array<i64: 1, 8>}, {pipeline_mode = #tpu.pipeline_mode<synchronous>, transform_indices = @transform_3, window_bounds = array<i64: 8, 16>}, {pipeline_mode = #tpu.pipeline_mode<synchronous>, transform_indices = @transform_4, window_bounds = array<i64: 1, 16>}, {transform_indices = @transform_5, window_bounds = array<i64: 1, 16, 256>}]} {
    %c0 = arith.constant 0 : index
    %c0_0 = arith.constant 0 : index
    %c0_1 = arith.constant 0 : index
    %0 = vector.load %arg1[%c0, %c0_0, %c0_1] : memref<1x16x256xf32, #tpu.memory_space<vmem>>, vector<1x16x256xf32>
    %cst = arith.constant dense<0.000000e+00> : vector<1x16xf32>
    %1 = vector.multi_reduction <add>, %0, %cst [2] : vector<1x16x256xf32> to vector<1x16xf32>
    %cst_2 = arith.constant 3.906250e-03 : f32
    %2 = vector.broadcast %cst_2 : f32 to vector<1x16xf32>
    %3 = arith.mulf %1, %2 : vector<1x16xf32>
    %c0_3 = arith.constant 0 : index
    %c0_4 = arith.constant 0 : index
    %4 = vector.load %arg2[%c0_3, %c0_4] : memref<16x8xf32, #tpu.memory_space<vmem>>, vector<16x8xf32>
    %cst_5 = arith.constant dense<0.000000e+00> : vector<1x8xf32>
    %5 = tpu.matmul %3, %4, %cst_5 {dimension_numbers = #tpu.dot_dimension_numbers<[1], [0], [0], [1], [0, 0, 1, 1], [], []>} : vector<1x16xf32>, vector<16x8xf32>, vector<1x8xf32> -> vector<1x8xf32>
    %c0_6 = arith.constant 0 : index
    %c0_7 = arith.constant 0 : index
    %6 = vector.load %arg3[%c0_6, %c0_7] : memref<1x8xf32, #tpu.memory_space<vmem>>, vector<1x8xf32>
    %7 = arith.addf %5, %6 : vector<1x8xf32>
    %cst_8 = arith.constant 0.000000e+00 : f32
    %8 = vector.broadcast %cst_8 : f32 to vector<1x8xf32>
    %9 = arith.maximumf %7, %8 : vector<1x8xf32>
    %c0_9 = arith.constant 0 : index
    %c0_10 = arith.constant 0 : index
    %10 = vector.load %arg4[%c0_9, %c0_10] : memref<8x16xf32, #tpu.memory_space<vmem>>, vector<8x16xf32>
    %cst_11 = arith.constant dense<0.000000e+00> : vector<1x16xf32>
    %11 = tpu.matmul %9, %10, %cst_11 {dimension_numbers = #tpu.dot_dimension_numbers<[1], [0], [0], [1], [0, 0, 1, 1], [], []>} : vector<1x8xf32>, vector<8x16xf32>, vector<1x16xf32> -> vector<1x16xf32>
    %c0_12 = arith.constant 0 : index
    %c0_13 = arith.constant 0 : index
    %12 = vector.load %arg5[%c0_12, %c0_13] : memref<1x16xf32, #tpu.memory_space<vmem>>, vector<1x16xf32>
    %13 = arith.addf %11, %12 : vector<1x16xf32>
    %14 = arith.negf %13 : vector<1x16xf32>
    %15 = math.exp %14 : vector<1x16xf32>
    %cst_14 = arith.constant 1.000000e+00 : f32
    %16 = vector.broadcast %cst_14 : f32 to vector<1x16xf32>
    %17 = arith.addf %16, %15 : vector<1x16xf32>
    %18 = arith.divf %16, %17 : vector<1x16xf32>
    %c0_15 = arith.constant 0 : index
    %c0_16 = arith.constant 0 : index
    %c0_17 = arith.constant 0 : index
    %19 = vector.load %arg1[%c0_15, %c0_16, %c0_17] : memref<1x16x256xf32, #tpu.memory_space<vmem>>, vector<1x16x256xf32>
    %20 = vector.shape_cast %18 : vector<1x16xf32> to vector<1x16x1xf32>
    %21 = vector.broadcast %20 : vector<1x16x1xf32> to vector<1x16x256xf32>
    %22 = arith.mulf %19, %21 : vector<1x16x256xf32>
    %c0_18 = arith.constant 0 : index
    %c0_19 = arith.constant 0 : index
    %c0_20 = arith.constant 0 : index
    %23 = vector.load %arg6[%c0_18, %c0_19, %c0_20] : memref<1x16x256xf32, #tpu.memory_space<vmem>>, vector<1x16x256xf32>
    tpu.vector_store %arg6[%c0_18, %c0_19, %c0_20], %22 {strides = array<i32>} : memref<1x16x256xf32, #tpu.memory_space<vmem>>, vector<1x16x256xf32>,
    return
  }
  func.func @transform_0(%arg0: i32) -> (i32, i32, i32) {
    %c0_i32 = arith.constant 0 : i32
    %c0_i32_0 = arith.constant 0 : i32
    %c0_i32_1 = arith.constant 0 : i32
    return %arg0, %c0_i32, %c0_i32_0 : i32, i32, i32
  }
  func.func @transform_1(%arg0: i32) -> (i32, i32) {
    %c0_i32 = arith.constant 0 : i32
    %c0_i32_0 = arith.constant 0 : i32
    %c0_i32_1 = arith.constant 0 : i32
    return %c0_i32, %c0_i32_0 : i32, i32
  }
  func.func @transform_2(%arg0: i32) -> (i32, i32) {
    %c0_i32 = arith.constant 0 : i32
    %c0_i32_0 = arith.constant 0 : i32
    %c0_i32_1 = arith.constant 0 : i32
    return %c0_i32, %c0_i32_0 : i32, i32
  }
  func.func @transform_3(%arg0: i32) -> (i32, i32) {
    %c0_i32 = arith.constant 0 : i32
    %c0_i32_0 = arith.constant 0 : i32
    %c0_i32_1 = arith.constant 0 : i32
    return %c0_i32, %c0_i32_0 : i32, i32
  }
  func.func @transform_4(%arg0: i32) -> (i32, i32) {
    %c0_i32 = arith.constant 0 : i32
    %c0_i32_0 = arith.constant 0 : i32
    %c0_i32_1 = arith.constant 0 : i32
    return %c0_i32, %c0_i32_0 : i32, i32
  }
  func.func @transform_5(%arg0: i32) -> (i32, i32, i32) {
    %c0_i32 = arith.constant 0 : i32
    %c0_i32_0 = arith.constant 0 : i32
    %c0_i32_1 = arith.constant 0 : i32
    return %arg0, %c0_i32, %c0_i32_0 : i32, i32, i32
  }
}

</mosaic_0001>

<bundles_post_ra>
// kernel: tpu_custom_call.1
= control target key start
LH: loop header
LB: loop body
LE: loop exit
PB: predicated region body
PF: predicated region fallthrough
CT: control target
= control target key end

     0   :  { %10 = vsyncpa [#allocation3], 0  ;;  %s955_s0 = inlined_call_operand.hbm [shape: f32[4,16,256], index: 0, kind: input, shape index: {}]   ;;  %s956_s1 = inlined_call_operand.vmem [shape: f32[16,8], index: 1, kind: input, shape index: {}]   ;;  %s957_s2 = inlined_call_operand.vmem [shape: f32[1,8], index: 2, kind: input, shape index: {}]   ;;  %s958_s3 = inlined_call_operand.vmem [shape: f32[8,16], index: 3, kind: input, shape index: {}]   ;;  %s959_s4 = inlined_call_operand.vmem [shape: f32[1,16], index: 4, kind: input, shape index: {}]   ;;  %s960_s5 = inlined_call_operand.hbm [shape: f32[4,16,256], index: 5, kind: output, shape index: {}]  }
   0x1   :  { %12 = vsyncpa [#allocation3 + $0x1], 0 }
   0x2   :  { %13 = vsyncpa [#allocation4], 0 }
   0x3   :  { %15 = vsyncpa [#allocation4 + $0x1], 0  ;;  %s768_s18 = smov 0   ;;  %s770_s19 = smov 0  }
   0x4   :  { %s772_s20 = smov 0   ;;  %s774_s21 = smov 0  }
   0x5 LB: > { %s789_s22 = sadd.s32 4294967295, %s727_s21   ;;  %s535_s23 = sadd.s32 4294967294, %s727_s21   ;;  %s727_s21 = sphi %s774_s21, %s972_s21   ;;  %s723_s20 = sphi %s772_s20, %s971_s20   ;;  %s719_s19 = sphi %s770_s19, %s970_s19   ;;  %s715_s18 = sphi %s768_s18, %s969_s18  }
   0x6   : > { %s793_s24 = sadd.s32 1, %s727_s21   ;;  %s28_s25 = sadd.s32 1, %s723_s20 }
   0x7   : > { %s25_s26 = ssub.s32 %s727_s21, %s793_s24  ;;  %p35_p0 = scmp.ne.s32.totalorder %s723_s20, %s719_s19 }
   0x8   : > { %p26_p1 = scmp.eq.s32.totalorder %s25_s26, 0  ;;  %p36_p2 = scmp.eq.s32.totalorder %s727_s21, 0 }
   0x9   : > { %p41_p3 = scmp.ne.s32.totalorder %s719_s19, %s715_s18  ;;  %p42_p4 = scmp.eq.s32.totalorder %s789_s22, 0 }
   0xa   : > { %s805_s27 = scalar_select %p26_p1, %s723_s20, %s28_s25  }
   0xb   : > { %p807_p5 = por %p36_p2, %p35_p0  ;;  %p811_p6 = por %p42_p4, %p41_p3 }
   0xc   : > { %p149_p7 = scmp.eq.s32.totalorder %s789_s22, 3  ;;  %p155_p8 = scmp.eq.s32.totalorder %s535_s23, 3 }
   0xd   : > { %p586_p9 = scmp.lt.s32.totalorder %s727_s21, 4  ;;  %s187_s7 = sand.u32 1, %s723_s20  }
   0xe   : > { %p817_p10 = por %p149_p7, %p35_p0  ;;  %p821_p11 = por %p155_p8, %p41_p3 }
   0xf   : > { %s552_s8 = sshll.u32 %s727_s21, 9  ;;  %s538_s9 = sshll.u32 %s187_s7, 5 }
  0x10   : > { %s964_s30 = scalar_select %p817_p10, 1, 0 }
  0x11   : > { %s965_s6 = scalar_select %p821_p11, 1, 0 }
  0x12   : > { %s830_s12 = scalar_lea.hbm %s955_s0, %s552_s8  ;;  %s191_s13 = scalar_lea.vmem [#allocation2], %s538_s9 }
  0x13   : > { %s198_s14 = sshll.u32 %s191_s13, 4  ;;  %p834_p12 = pnand %p586_p9, %p807_p5  ;;  %s838_s14 = int_to_ptr.vmem [resolvable:$true] %s198_s14 }
  0x14   : > { %s840_s16 = scalar_lea.sflag [#allocation3], %s187_s7  ;;  %s631_s17 = scalar_lea.hbm %s830_s12, 512 }
  0x15   : > { %p632_p13 = scmp.ne.s32.totalorder %s830_s12, %s631_s17  ;;  %p633_p0 = pneg %p834_p12 }
  0x16   : > { %s636_s26 = scalar_lea.hbm %s955_s0, 2048  ;;  %p637_p3 = scmp.lt.u32.totalorder %s830_s12, %s955_s0 }
  0x17   : > { %p634_p1 = pnand %p633_p0, %p632_p13  ;;  %p638_p4 = scmp.lt.u32.totalorder %s636_s26, %s631_s17 }
  0x18   : > { %p640_p7 = scmp.lt.u32.totalorder %s631_s17, %s830_s12 }
  0x19   : > { %p635_p2 = pneg %p634_p1  ;;  %p639_p5 = por %p638_p4, %p637_p3 }
  0x1b   : > { %p641_p8 = por %p640_p7, %p639_p5 }
  0x1d   : > { %p642_p9 = pnand %p641_p8, %p635_p2 }
  0x1f   : > { %645 = shalt.err (!%p642_p9)
}
  0x20   : > { %s646_s7 = scalar_lea.vmem %s838_s14, 512  ;;  %s729_s9 = smov [#allocation2]  }
  0x21   : > { %p647_p13 = scmp.ne.s32.totalorder %s838_s14, %s646_s7  ;;  %s651_s10 = sshll.u32 %s729_s9, 4  ;;  %s652_s10 = int_to_ptr.vmem [resolvable:$false] %s651_s10 }
  0x22   : > { %s653_s11 = scalar_lea.vmem %s652_s10, 1024  ;;  %p654_p10 = scmp.lt.s32.totalorder %s838_s14, %s652_s10 }
  0x23   : > { %p649_p1 = pnand %p647_p13, %p633_p0  ;;  %p655_p3 = scmp.lt.s32.totalorder %s653_s11, %s646_s7 }
  0x25   : > { %p650_p11 = pneg %p649_p1  ;;  %p656_p4 = por %p655_p3, %p654_p10 }
  0x27   : > { %p657_p5 = pnand %p656_p4, %p650_p11 }
  0x29   : > { %660 = shalt.err (!%p657_p5)
}
  0x2a   : > { %s730_s13 = smov 256   ;;  %s731_s17 = smov 16  }
  0x2b   : > { %581 = dma.hbm_to_vmem [thread:$0]  (!%p834_p12), %s830_s12, 512, %s838_s14, %s840_s16, %s730_s13, %s730_s13, %s731_s17  }
  0x2c   : > { %p541_p0 = scmp.ge.s32.totalorder %s727_s21, 1  ;;  %p206_p2 = scmp.lt.s32.totalorder %s727_s21, 5 }
  0x2e   : > { %p207_p7 = pnand %p541_p0, %p206_p2 }
  0x2f   : > { %s871_s23 = sand.u32 (!%p207_p7), 1, %s719_s19  }
  0x30   : > { %210 = sbr.rel (%p207_p7) target bundleno = 804 (0x324), region = 40  ;;  %s542_s25 = sshll.u32 (!%p207_p7), %s871_s23, 5 }
  0x31   : > { %s213_s26 = scalar_lea.sflag (!%p207_p7), [#allocation3], %s871_s23  ;;  %s216_s28 = scalar_lea.vmem (!%p207_p7), [#allocation2], %s542_s25 }
  0x37   : > { %706 = dma.done.wait (%p811_p6), %s213_s26, 512  }
  0x38   : > { %708 = vsyncadd (%p811_p6), %s213_s26, 4294966784  ;;  %v243_v0 = vld [vmem:[%s216_s28] sm:$0xff]  ;;  %v244_v1 = vld [vmem:[%s216_s28 + $0x8] sm:$0xff]  ;;  %v732_v9 = vmov 0.0|0.0   ;;  %vm733_vm0 = vmmov 0   ;;  %v734_v10 = vmov 0.0   ;;  %v260_v11 = vlaneseq }
  0x39   : > { %v881_v2 = vld [vmem:[%s216_s28 + $0x10] sm:$0xff]  ;;  %v247_v3 = vadd.f32 %v244_v1, %v243_v0  ;;  %v883_v4 = vld [vmem:[%s216_s28 + $0x18] sm:$0xff]  ;;  %v255_v6 = vld [vmem:[%s956_s1] sm:$0xff]  ;;  %571 = vmatprep.subr.bf16.mxu0 %v732_v9  ;;  %563 = vmatprep.mubr.msk.f32.mxu0 %vm733_vm0, %v734_v10  ;;  %vm271_vm1 = vcmask 130112   ;;  %vm273_vm2 = vcmask 130048   ;;  %vm349_vm3 = vcmask 64512  }
  0x3a   : > { %v250_v5 = vadd.f32 %v883_v4, %v881_v2  ;;  %v256_v7 = vld [vmem:[%s956_s1 + $0x8] sm:$0xff]  ;;  %566 = vmatprep.subr.mxu1 %v734_v10  ;;  %568 = vmatprep.mubr.msk.f32.mxu1 %vm733_vm0, %v734_v10  ;;  %v261_v12 = vand.u32 127, %v260_v11  ;;  %v263_v13 = vshrl.u32 %v260_v11, 7  ;;  %v347_v24 = vld [vmem:[%s958_s3] sm:$0xff]  ;;  %s242_s13 = scalar_lea.vmem [#allocation5], %s542_s25  ;;  %s553_s26 = sshll.u32 %s789_s22, 9 }
  0x3b   : > { %248 = vadd.xlane.f32.xlu0 %v247_v3  ;;  %v572_v8 = vpack.c.bf16 %v256_v7, %v255_v6  ;;  %567 = vmatpush3.msra.mxu1 %v347_v24  ;;  %v257_v25 = vld [vmem:[%s957_s2] sm:$0x1]  ;;  %s462_s17 = sshll.u32 %s242_s13, 4  ;;  %s910_s14 = scalar_lea.hbm %s960_s5, %s553_s26  ;;  %s905_s17 = int_to_ptr.vmem [resolvable:$true] %s462_s17 }
  0x3c   : > { %v266_v14 = vadd.s32 4294967288, %v261_v12  ;;  %v264_v16 = vsub.s32 %v261_v12, %v263_v13  ;;  %v348_v30 = vld [vmem:[%s959_s4] sm:$0x1]  ;;  %v431_v37 = vsub.s32 0, %v263_v13  ;;  %s449_s22 = scalar_lea.sflag [#allocation4], %s871_s23  ;;  %s661_s25 = scalar_lea.vmem %s905_s17, 512 }
  0x3d   : > { %573 = vmatpush3.bf16.msra.mxu0 %v572_v8  ;;  %p662_p6 = scmp.ne.s32.totalorder %s905_s17, %s661_s25  ;;  %p967_p10 = scmp.ne.s32.totalorder %s964_s30, 0 }
  0x3e   : > { %v269_v18 = vsub.s32 %v266_v14, %v263_v13  ;;  %s735_s15 = smov [#allocation5]  }
  0x3f   : > { %251 = vadd.xlane.f32.xlu0 %v250_v5  ;;  %p663_p11 = pnand %p662_p6, %p967_p10  ;;  %s665_s16 = sshll.u32 %s735_s15, 4  ;;  %s666_s16 = int_to_ptr.vmem [resolvable:$false] %s665_s16 }
  0x40   : > { %s667_s29 = scalar_lea.vmem %s666_s16, 1024  ;;  %p668_p8 = scmp.lt.s32.totalorder %s905_s17, %s666_s16 }
  0x41   : > { %p664_p12 = pneg %p663_p11  ;;  %p669_p9 = scmp.lt.s32.totalorder %s667_s29, %s661_s25 }
  0x43   : > { %p670_p13 = por %p669_p9, %p668_p8 }
  0x45   : > { %p671_p1 = pnand %p670_p13, %p664_p12 }
  0xc8   : > { %v249_v15 = vpop.xlane.xlu0 %248 }
  0xc9   : > { %v253_v17 = vmul.f32 0.00390625, %v249_v15 }
  0xcb   : > { %v265_v21 = vrot.slane %v253_v17, %v264_v16 }
  0xcc   : > { %v252_v19 = vpop.xlane.xlu0 %251 }
  0xcd   : > { %v254_v20 = vmul.f32 0.00390625, %v252_v19 }
  0xcf   : > { %v270_v22 = vrot.slane %v254_v20, %v269_v18 }
  0xd1   : > { %v272_v23 = vsel %vm271_vm1, %v270_v22, %v265_v21 }
  0xd2   : > { %564 = vmatmul.mubr.msk.f32.vlgmr.msra.gmra.mrb[0].mxu0 %vm273_vm2, %v272_v23 }
 0x1a5   : > { %v342_v26 = vpop.f32.mrb[0].mxu0 }
 0x1a6   : > { %v343_v27 = vadd.f32 %v342_v26, %v257_v25  ;;  %v565_v28 = vpop.f32.mrb[1].mxu0 }
 0x1a8   : > { %v346_v29 = vmax.f32 %v343_v27, 0.0 }
 0x1aa   : > { %569 = vmatmul.mubr.msk.f32.vlgmr.msra.gmra.mrb[0].mxu1 %vm349_vm3, %v346_v29 }
 0x27d   : > { %v419_v31 = vpop.f32.mrb[0].mxu1 }
 0x27e   : > { %v420_v32 = vadd.f32 %v419_v31, %v348_v30  ;;  %v570_v33 = vpop.f32.mrb[1].mxu1 }
 0x280   : > { %v546_v34 = vmul.f32 -1.442695, %v420_v32 }
 0x282   : > { %627 = vpow2.f32 %v546_v34 }
 0x28c   : > { %v628_v35 = vpop.eup %627 }
 0x28d   : > { %v426_v36 = vadd.f32 1.0, %v628_v35 }
 0x28f   : > { %629 = vrcp.f32 %v426_v36 }
 0x299   : > { %v630_v38 = vpop.eup %629 }
 0x29a   : > { %v432_v39 = vrot.slane %v630_v38, %v431_v37 }
 0x29c   : > { %434 = vbcast.lane.b32.xlu1 %v432_v39, 256 }
 0x2a0   : > { %438 = vbcast.lane.b32.xlu1 %v432_v39, 264 }
 0x30e   : > { %v435_v40 = vpop.permute.xlu1 %434 }
 0x30f   : > { %v440_v41 = vmul.f32 %v435_v40, %v243_v0  ;;  %v441_v42 = vmul.f32 %v435_v40, %v244_v1 }
 0x311   : > { %444 = vst [vmem:[%s242_s13] sm:$0xff] %v440_v41  ;;  %445 = vst [vmem:[%s242_s13 + $0x8] sm:$0xff] %v441_v42 }
 0x312   : > { %v439_v43 = vpop.permute.xlu1 %438 }
 0x313   : > { %v442_v44 = vmul.f32 %v439_v43, %v881_v2  ;;  %v443_v45 = vmul.f32 %v439_v43, %v883_v4 }
 0x315   : > { %446 = vst [vmem:[%s242_s13 + $0x10] sm:$0xff] %v442_v44  ;;  %447 = vst [vmem:[%s242_s13 + $0x18] sm:$0xff] %v443_v45 }
 0x316   : > { %674 = shalt.err (!%p671_p1)
}
 0x317   : > { %s675_s8 = scalar_lea.hbm %s910_s14, 512  ;;  %s679_s10 = scalar_lea.hbm %s960_s5, 2048 }
 0x318   : > { %p676_p3 = scmp.ne.s32.totalorder %s910_s14, %s675_s8  ;;  %p680_p0 = scmp.lt.u32.totalorder %s910_s14, %s960_s5 }
 0x319   : > { %p681_p2 = scmp.lt.u32.totalorder %s679_s10, %s675_s8  ;;  %p683_p6 = scmp.lt.u32.totalorder %s675_s8, %s910_s14 }
 0x31a   : > { %p677_p4 = pnand %p676_p3, %p967_p10 }
 0x31b   : > { %p682_p7 = por %p681_p2, %p680_p0 }
 0x31c   : > { %p678_p5 = pneg %p677_p4 }
 0x31d   : > { %p684_p11 = por %p683_p6, %p682_p7 }
 0x31f   : > { %p685_p12 = pnand %p684_p11, %p678_p5 }
 0x321   : > { %688 = shalt.err (!%p685_p12)
}
 0x322   : > { %s736_s26 = smov 256   ;;  %s737_s28 = smov 16  }
 0x323   : > { %576 = dma.vmem_to_hbm [thread:$0]  (%p967_p10), %s905_s17, 512, %s910_s14, %s449_s22, %s736_s26, %s736_s26, %s737_s28  }
 0x324 PF: > { %p587_p8 = scmp.ge.s32.totalorder %s727_s21, 2  ;;  %s477_s12 = sand.u32 1, %s715_s18  }
 0x325   : > { %p968_p9 = scmp.ne.s32.totalorder %s965_s6, 0  ;;  %s478_s25 = scalar_lea.sflag [#allocation4], %s477_s12 }
 0x327   : > { %p583_p13 = pnand %p587_p8, %p968_p9 }
 0x329   : > { %710 = dma.done.wait (!%p583_p13), %s478_s25, 512  }
 0x32a   : > { %712 = vsyncadd (!%p583_p13), %s478_s25, 4294966784  ;;  %p18_p1 = scmp.ge.s32.totalorder %s793_s24, 6   ;;  %s969_s18 = smov %s719_s19 }
 0x32b   : > { %s970_s19 = smov %s723_s20  ;;  %s971_s20 = smov %s805_s27 }
 0x32c   : > { %s972_s21 = smov %s793_s24  ;;  %20 = sbr.rel (!%p18_p1) target bundleno = 5 (0x5), region = 85 }
 0x333   :  { %483 = vsyncpa [#allocation3], 1 }
 0x334   :  { %485 = vsyncpa [#allocation3 + $0x1], 1 }
 0x335   :  { %486 = vsyncpa [#allocation4], 1 }
 0x336   :  { %488 = vsyncpa [#allocation4 + $0x1], 1 }

</bundles_post_ra>
